<compile_context>
chip_gen: v7x
topology: tpu7x:2x2x1
jax: 0.10.0
libtpu: 0.0.40
codegen_flags: <defaults>
</compile_context>

<pallas_src>
import jax
import jax.numpy as jnp
from jax import lax
from jax.experimental import pallas as pl
from jax.experimental.pallas import tpu as pltpu

# ----- model hyperparameters (match the PyTorch module) -----
BLOCK_SIZE = 3      # block_size
VOCAB_LEN = 3       # vocab_len
N_EMBED = 32        # n_embed (head_size == n_embed inside HeadModel)

# ----- kernel padding constants -----
T_PAD = 8           # sublane-aligned padded sequence length (>= BLOCK_SIZE)
V_EMB_PAD = 8       # sublane-aligned padded vocab rows for the token table
V_PAD = 128         # lane-dense padded logits width (>= VOCAB_LEN)
NEG_INF = -1e30     # finite mask value (no NaN risk)


def head_model_kernel(idx_ref, tok_emb_ref, pos_emb_ref, wqkv_ref, wlm_ref,
                      logits_ref):
    """One grid step == one batch element.

    idx_ref:    (T_PAD, 1)        int32  padded token ids for this batch row
    tok_emb_ref:(V_EMB_PAD, C)    bf16   zero-padded token embedding table
    pos_emb_ref:(T_PAD, C)        f32    zero-padded positional embedding table
    wqkv_ref:   (C, 3C)           bf16   [W_k^T | W_q^T | W_v^T]
    wlm_ref:    (C, V_PAD)        bf16   lm_head^T zero-padded to 128 lanes
    logits_ref: (T_PAD, V_PAD)    f32    lane-dense logits (valid = [:T, :V])
    """
    Tp = pos_emb_ref.shape[0]
    Vp = tok_emb_ref.shape[0]
    C = tok_emb_ref.shape[1]

    # ---- fused token + position embedding (one-hot gather on the MXU) ----
    idx_col = idx_ref[...]                                         # (Tp, 1) i32
    eq = idx_col == lax.broadcasted_iota(jnp.int32, (Tp, Vp), 1)   # (Tp, Vp)
    one_hot = jnp.where(eq, 1.0, 0.0).astype(jnp.bfloat16)
    tok = jnp.dot(one_hot, tok_emb_ref[...],
                  preferred_element_type=jnp.float32)              # (Tp, C) f32
    x = (tok + pos_emb_ref[...]).astype(jnp.bfloat16)              # (Tp, C) bf16

    # ---- fused k/q/v projection: one MXU matmul, f32 accumulation ----
    qkv = jnp.dot(x, wqkv_ref[...], preferred_element_type=jnp.float32)
    k = qkv[:, 0 * C:1 * C]
    q = qkv[:, 1 * C:2 * C]
    v = qkv[:, 2 * C:3 * C]

    # ---- scores: contract last dims of q and k (no explicit transpose) ----
    wei = lax.dot_general(q, k, dimension_numbers=(((1,), (1,)), ((), ())),
                          preferred_element_type=jnp.float32) * (C ** -0.5)

    # ---- in-kernel causal mask (covers T_PAD padding too) ----
    row = lax.broadcasted_iota(jnp.int32, (Tp, Tp), 0)
    col = lax.broadcasted_iota(jnp.int32, (Tp, Tp), 1)
    wei = jnp.where(col <= row, wei, NEG_INF)

    # ---- numerically-stable softmax (exp + approx reciprocal on the EUP) ----
    wei = wei - jnp.max(wei, axis=-1, keepdims=True)
    p = jnp.exp(wei)
    p = p * pl.reciprocal(jnp.sum(p, axis=-1, keepdims=True), approx=True)

    out = jnp.dot(p, v, preferred_element_type=jnp.float32)        # (Tp, C) f32

    # ---- lane-dense lm_head: (Tp, C) @ (C, 128), unmasked full-width store ----
    logits_ref[...] = jnp.dot(out.astype(jnp.bfloat16), wlm_ref[...],
                              preferred_element_type=jnp.float32)


def prepare_params(params):
    """One-time weight preprocessing (hoisted out of the forward pass)."""
    V, C = params["token_emb"].shape
    tok_emb_p = jnp.zeros((V_EMB_PAD, C), jnp.bfloat16).at[:V].set(
        params["token_emb"].astype(jnp.bfloat16))
    pos_emb_p = jnp.zeros((T_PAD, C), jnp.float32).at[:BLOCK_SIZE].set(
        params["pos_emb"].astype(jnp.float32))
    w_qkv = jnp.concatenate(
        [params["w_key"].T, params["w_query"].T, params["w_value"].T],
        axis=1).astype(jnp.bfloat16)                               # (C, 3C)
    Vout = params["w_lm"].shape[0]
    w_lm_pad = jnp.zeros((C, V_PAD), jnp.bfloat16).at[:, :Vout].set(
        params["w_lm"].T.astype(jnp.bfloat16))                     # (C, V_PAD)
    return {"tok_emb_p": tok_emb_p, "pos_emb_p": pos_emb_p,
            "w_qkv": w_qkv, "w_lm_pad": w_lm_pad}


def head_model_forward(idx, prepared, targets=None):
    """idx: int32 [B, T] (T <= BLOCK_SIZE). Returns (logits [B,T,V] f32, loss)."""
    B, T = idx.shape
    C = prepared["w_qkv"].shape[0]
    V = VOCAB_LEN

    # pad ids to the sublane-aligned row count; extra rows are causally inert
    idx_pad = jnp.zeros((B, T_PAD, 1), jnp.int32).at[:, :T, 0].set(
        idx.astype(jnp.int32))

    logits_pad = pl.pallas_call(
        head_model_kernel,
        out_shape=jax.ShapeDtypeStruct((B, T_PAD, V_PAD), jnp.float32),
        grid_spec=pltpu.PrefetchScalarGridSpec(
            num_scalar_prefetch=0,
            grid=(B,),
            in_specs=[
                pl.BlockSpec((None, T_PAD, 1), lambda b: (b, 0, 0)),   # idx
                pl.BlockSpec((V_EMB_PAD, C), lambda b: (0, 0)),        # tok table
                pl.BlockSpec((T_PAD, C), lambda b: (0, 0)),            # pos table
                pl.BlockSpec((C, 3 * C), lambda b: (0, 0)),            # W_qkv^T
                pl.BlockSpec((C, V_PAD), lambda b: (0, 0)),            # W_lm^T pad
            ],
            out_specs=pl.BlockSpec((None, T_PAD, V_PAD), lambda b: (b, 0, 0)),
        ),
        compiler_params=pltpu.CompilerParams(
            dimension_semantics=("parallel",)),
    )(idx_pad, prepared["tok_emb_p"], prepared["pos_emb_p"],
      prepared["w_qkv"], prepared["w_lm_pad"])

    # drop padded rows / lanes before anything downstream sees the logits
    logits = logits_pad[:, :T, :V]

    if targets is None:
        loss = None
    else:
        logp = jax.nn.log_softmax(logits.reshape(B * T, V), axis=-1)
        loss = -jnp.mean(jnp.take_along_axis(
            logp, targets.reshape(B * T, 1).astype(jnp.int32), axis=1))
    return logits, loss


def init_params(key, vocab_len=VOCAB_LEN, block_size=BLOCK_SIZE, n_embed=N_EMBED):
    ks = jax.random.split(key, 6)
    s = 0.02
    return {
        "token_emb": s * jax.random.normal(ks[0], (vocab_len, n_embed), jnp.float32),
        "pos_emb":   s * jax.random.normal(ks[1], (block_size, n_embed), jnp.float32),
        # nn.Linear weights stored [out_features, in_features] like PyTorch
        "w_key":     s * jax.random.normal(ks[2], (n_embed, n_embed), jnp.float32),
        "w_query":   s * jax.random.normal(ks[3], (n_embed, n_embed), jnp.float32),
        "w_value":   s * jax.random.normal(ks[4], (n_embed, n_embed), jnp.float32),
        "w_lm":      s * jax.random.normal(ks[5], (vocab_len, n_embed), jnp.float32),
    }


def _reference_forward_f32(idx, params):
    """Plain f32 JAX reference mirroring the PyTorch forward exactly."""
    B, T = idx.shape
    x = params["token_emb"][idx] + params["pos_emb"][jnp.arange(T)][None]
    C = x.shape[-1]
    k = x @ params["w_key"].T
    q = x @ params["w_query"].T
    v = x @ params["w_value"].T
    wei = (q @ jnp.swapaxes(k, -2, -1)) * (C ** -0.5)
    mask = jnp.tril(jnp.ones((T, T), bool))
    wei = jnp.where(mask[None], wei, -jnp.inf)
    wei = jax.nn.softmax(wei, axis=-1)
    out = wei @ v
    return out @ params["w_lm"].T


def _reference_forward_mixed(idx, params):
    """Mirrors the kernel's bf16-input / f32-accumulate math path."""
    B, T = idx.shape
    C = params["token_emb"].shape[1]
    V = params["w_lm"].shape[0]
    tok = params["token_emb"].astype(jnp.bfloat16)[idx].astype(jnp.float32)
    pos = params["pos_emb"][jnp.arange(T)].astype(jnp.float32)
    x = (tok + pos[None]).astype(jnp.bfloat16)                     # (B, T, C)
    w_qkv = jnp.concatenate([params["w_key"].T, params["w_query"].T,
                             params["w_value"].T], axis=1).astype(jnp.bfloat16)
    w_lm = params["w_lm"].T.astype(jnp.bfloat16)

    def per_batch(xb):
        qkv = jnp.dot(xb, w_qkv, preferred_element_type=jnp.float32)
        k, q, v = qkv[:, :C], qkv[:, C:2 * C], qkv[:, 2 * C:]
        wei = lax.dot_general(q, k, (((1,), (1,)), ((), ())),
                              preferred_element_type=jnp.float32) * (C ** -0.5)
        wei = jnp.where(jnp.tril(jnp.ones((T, T), bool)), wei, NEG_INF)
        wei = wei - wei.max(axis=-1, keepdims=True)
        p = jnp.exp(wei)
        p = p / p.sum(axis=-1, keepdims=True)
        out = jnp.dot(p, v, preferred_element_type=jnp.float32)
        return jnp.dot(out.astype(jnp.bfloat16), w_lm,
                       preferred_element_type=jnp.float32)
    return jax.vmap(per_batch)(x).reshape(B, T, V)


if __name__ == "__main__":
    key = jax.random.PRNGKey(0)
    pkey, ikey = jax.random.split(key)
    params = init_params(pkey)
    prepared = prepare_params(params)          # hoisted: done once, not per call

    B, T = 2, BLOCK_SIZE                       # T = 3 (<= block_size)
    idx = jax.random.randint(ikey, (B, T), 0, VOCAB_LEN, dtype=jnp.int32)

    logits, loss = head_model_forward(idx, prepared)
    logits = jax.block_until_ready(logits)

    assert logits.shape == (B, T, VOCAB_LEN)
    assert loss is None

    # tight check against a reference mirroring the kernel's mixed-precision path
    ref_mixed = _reference_forward_mixed(idx, params)
    assert jnp.allclose(logits, ref_mixed, atol=2e-5, rtol=1e-2), (
        float(jnp.max(jnp.abs(logits - ref_mixed))))

    # sanity check against the exact f32 PyTorch-equivalent math
    ref_f32 = _reference_forward_f32(idx, params)
    assert jnp.allclose(logits, ref_f32, atol=1e-4, rtol=5e-2), (
        float(jnp.max(jnp.abs(logits - ref_f32))))

    # exercise the targets / cross-entropy path as well
    targets = jax.random.randint(jax.random.PRNGKey(1), (B, T), 0, VOCAB_LEN,
                                 dtype=jnp.int32)
    _, loss2 = head_model_forward(idx, prepared, targets=targets)
    assert loss2 is not None and bool(jnp.isfinite(loss2))

    print("KERNEL_OK")
</pallas_src>

<mosaic_0001>
module attributes {stable_mosaic.version = 11 : i64} {
  func.func @head_model_kernel(%arg0: i32, %arg1: memref<1x8x1xi32, #tpu.memory_space<vmem>>, %arg2: memref<8x32xbf16, #tpu.memory_space<vmem>>, %arg3: memref<8x32xf32, #tpu.memory_space<vmem>>, %arg4: memref<32x96xbf16, #tpu.memory_space<vmem>>, %arg5: memref<32x128xbf16, #tpu.memory_space<vmem>>, %arg6: memref<1x8x128xf32, #tpu.memory_space<vmem>>) attributes {dimension_semantics = [#tpu.dimension_semantics<parallel>], iteration_bounds = array<i64: 2>, scalar_prefetch = 0 : i64, scratch_operands = 0 : i64, tpu.core_type = #tpu.core_type<tc>, window_params = [{transform_indices = @transform_0, window_bounds = array<i64: 1, 8, 1>}, {pipeline_mode = #tpu.pipeline_mode<synchronous>, transform_indices = @transform_1, window_bounds = array<i64: 8, 32>}, {pipeline_mode = #tpu.pipeline_mode<synchronous>, transform_indices = @transform_2, window_bounds = array<i64: 8, 32>}, {pipeline_mode = #tpu.pipeline_mode<synchronous>, transform_indices = @transform_3, window_bounds = array<i64: 32, 96>}, {pipeline_mode = #tpu.pipeline_mode<synchronous>, transform_indices = @transform_4, window_bounds = array<i64: 32, 128>}, {transform_indices = @transform_5, window_bounds = array<i64: 1, 8, 128>}]} {
    %c0 = arith.constant 0 : index
    %c0_0 = arith.constant 0 : index
    %c0_1 = arith.constant 0 : index
    %0 = vector.load %arg1[%c0, %c0_0, %c0_1] : memref<1x8x1xi32, #tpu.memory_space<vmem>>, vector<1x8x1xi32>
    %1 = vector.shape_cast %0 : vector<1x8x1xi32> to vector<8x1xi32>
    %2 = tpu.iota {dimensions = array<i32: 1>} : vector<8x8xi32>
    %3 = vector.broadcast %1 : vector<8x1xi32> to vector<8x8xi32>
    %4 = arith.cmpi eq, %3, %2 : vector<8x8xi32>
    %cst = arith.constant 1.000000e+00 : f32
    %cst_2 = arith.constant 0.000000e+00 : f32
    %5 = vector.broadcast %cst : f32 to vector<8x8xf32>
    %6 = vector.broadcast %cst_2 : f32 to vector<8x8xf32>
    %7 = arith.select %4, %5, %6 : vector<8x8xi1>, vector<8x8xf32>
    %8 = arith.truncf %7 : vector<8x8xf32> to vector<8x8xbf16>
    %c0_3 = arith.constant 0 : index
    %c0_4 = arith.constant 0 : index
    %9 = vector.load %arg2[%c0_3, %c0_4] : memref<8x32xbf16, #tpu.memory_space<vmem>>, vector<8x32xbf16>
    %cst_5 = arith.constant dense<0.000000e+00> : vector<8x32xf32>
    %10 = tpu.matmul %8, %9, %cst_5 {dimension_numbers = #tpu.dot_dimension_numbers<[1], [0], [0], [1], [0, 0, 1, 1], [], []>} : vector<8x8xbf16>, vector<8x32xbf16>, vector<8x32xf32> -> vector<8x32xf32>
    %c0_6 = arith.constant 0 : index
    %c0_7 = arith.constant 0 : index
    %11 = vector.load %arg3[%c0_6, %c0_7] : memref<8x32xf32, #tpu.memory_space<vmem>>, vector<8x32xf32>
    %12 = arith.addf %10, %11 : vector<8x32xf32>
    %13 = arith.truncf %12 : vector<8x32xf32> to vector<8x32xbf16>
    %c0_8 = arith.constant 0 : index
    %c0_9 = arith.constant 0 : index
    %14 = vector.load %arg4[%c0_8, %c0_9] : memref<32x96xbf16, #tpu.memory_space<vmem>>, vector<32x96xbf16>
    %cst_10 = arith.constant dense<0.000000e+00> : vector<8x96xf32>
    %15 = tpu.matmul %13, %14, %cst_10 {dimension_numbers = #tpu.dot_dimension_numbers<[1], [0], [0], [1], [0, 0, 1, 1], [], []>} : vector<8x32xbf16>, vector<32x96xbf16>, vector<8x96xf32> -> vector<8x96xf32>
    %16 = vector.extract_strided_slice %15 {offsets = [0, 0], sizes = [8, 32], strides = [1, 1]} : vector<8x96xf32> to vector<8x32xf32>
    %17 = vector.extract_strided_slice %15 {offsets = [0, 32], sizes = [8, 32], strides = [1, 1]} : vector<8x96xf32> to vector<8x32xf32>
    %18 = vector.extract_strided_slice %15 {offsets = [0, 64], sizes = [8, 32], strides = [1, 1]} : vector<8x96xf32> to vector<8x32xf32>
    %cst_11 = arith.constant dense<0.000000e+00> : vector<8x8xf32>
    %19 = tpu.matmul %17, %16, %cst_11 {dimension_numbers = #tpu.dot_dimension_numbers<[1], [1], [0], [0], [0, 0, 1, 0], [], []>} : vector<8x32xf32>, vector<8x32xf32>, vector<8x8xf32> -> vector<8x8xf32>
    %cst_12 = arith.constant 0.176776692 : f32
    %20 = vector.broadcast %cst_12 : f32 to vector<8x8xf32>
    %21 = arith.mulf %19, %20 : vector<8x8xf32>
    %22 = tpu.iota {dimensions = array<i32: 0>} : vector<8x8xi32>
    %23 = tpu.iota {dimensions = array<i32: 1>} : vector<8x8xi32>
    %24 = arith.cmpi sle, %23, %22 : vector<8x8xi32>
    %cst_13 = arith.constant -1.000000e+30 : f32
    %25 = vector.broadcast %cst_13 : f32 to vector<8x8xf32>
    %26 = arith.select %24, %21, %25 : vector<8x8xi1>, vector<8x8xf32>
    %cst_14 = arith.constant dense<0xFF800000> : vector<8xf32>
    %27 = vector.multi_reduction <maximumf>, %26, %cst_14 [1] : vector<8x8xf32> to vector<8xf32>
    %28 = vector.shape_cast %27 : vector<8xf32> to vector<8x1xf32>
    %29 = vector.broadcast %28 : vector<8x1xf32> to vector<8x8xf32>
    %30 = arith.subf %26, %29 : vector<8x8xf32>
    %31 = math.exp %30 : vector<8x8xf32>
    %cst_15 = arith.constant dense<0.000000e+00> : vector<8xf32>
    %32 = vector.multi_reduction <add>, %31, %cst_15 [1] : vector<8x8xf32> to vector<8xf32>
    %33 = vector.shape_cast %32 : vector<8xf32> to vector<8x1xf32>
    %34 = tpu.reciprocal %33 {approx = true} : vector<8x1xf32> -> vector<8x1xf32>
    %35 = vector.broadcast %34 : vector<8x1xf32> to vector<8x8xf32>
    %36 = arith.mulf %31, %35 : vector<8x8xf32>
    %cst_16 = arith.constant dense<0.000000e+00> : vector<8x32xf32>
    %37 = tpu.matmul %36, %18, %cst_16 {dimension_numbers = #tpu.dot_dimension_numbers<[1], [0], [0], [1], [0, 0, 1, 1], [], []>} : vector<8x8xf32>, vector<8x32xf32>, vector<8x32xf32> -> vector<8x32xf32>
    %38 = arith.truncf %37 : vector<8x32xf32> to vector<8x32xbf16>
    %c0_17 = arith.constant 0 : index
    %c0_18 = arith.constant 0 : index
    %39 = vector.load %arg5[%c0_17, %c0_18] : memref<32x128xbf16, #tpu.memory_space<vmem>>, vector<32x128xbf16>
    %cst_19 = arith.constant dense<0.000000e+00> : vector<8x128xf32>
    %40 = tpu.matmul %38, %39, %cst_19 {dimension_numbers = #tpu.dot_dimension_numbers<[1], [0], [0], [1], [0, 0, 1, 1], [], []>} : vector<8x32xbf16>, vector<32x128xbf16>, vector<8x128xf32> -> vector<8x128xf32>
    %c0_20 = arith.constant 0 : index
    %c0_21 = arith.constant 0 : index
    %c0_22 = arith.constant 0 : index
    %41 = vector.load %arg6[%c0_20, %c0_21, %c0_22] : memref<1x8x128xf32, #tpu.memory_space<vmem>>, vector<1x8x128xf32>
    %42 = vector.shape_cast %41 : vector<1x8x128xf32> to vector<8x128xf32>
    %43 = vector.shape_cast %40 : vector<8x128xf32> to vector<1x8x128xf32>
    tpu.vector_store %arg6[%c0_20, %c0_21, %c0_22], %43 {strides = array<i32>} : memref<1x8x128xf32, #tpu.memory_space<vmem>>, vector<1x8x128xf32>,
    return
  }
  func.func @transform_0(%arg0: i32) -> (i32, i32, i32) {
    %c0_i32 = arith.constant 0 : i32
    %c0_i32_0 = arith.constant 0 : i32
    %c0_i32_1 = arith.constant 0 : i32
    return %arg0, %c0_i32, %c0_i32_0 : i32, i32, i32
  }
  func.func @transform_1(%arg0: i32) -> (i32, i32) {
    %c0_i32 = arith.constant 0 : i32
    %c0_i32_0 = arith.constant 0 : i32
    %c0_i32_1 = arith.constant 0 : i32
    return %c0_i32, %c0_i32_0 : i32, i32
  }
  func.func @transform_2(%arg0: i32) -> (i32, i32) {
    %c0_i32 = arith.constant 0 : i32
    %c0_i32_0 = arith.constant 0 : i32
    %c0_i32_1 = arith.constant 0 : i32
    return %c0_i32, %c0_i32_0 : i32, i32
  }
  func.func @transform_3(%arg0: i32) -> (i32, i32) {
    %c0_i32 = arith.constant 0 : i32
    %c0_i32_0 = arith.constant 0 : i32
    %c0_i32_1 = arith.constant 0 : i32
    return %c0_i32, %c0_i32_0 : i32, i32
  }
  func.func @transform_4(%arg0: i32) -> (i32, i32) {
    %c0_i32 = arith.constant 0 : i32
    %c0_i32_0 = arith.constant 0 : i32
    %c0_i32_1 = arith.constant 0 : i32
    return %c0_i32, %c0_i32_0 : i32, i32
  }
  func.func @transform_5(%arg0: i32) -> (i32, i32, i32) {
    %c0_i32 = arith.constant 0 : i32
    %c0_i32_0 = arith.constant 0 : i32
    %c0_i32_1 = arith.constant 0 : i32
    return %arg0, %c0_i32, %c0_i32_0 : i32, i32, i32
  }
}

</mosaic_0001>

<bundles_post_ra>
// kernel: tpu_custom_call.1
= control target key start
LH: loop header
LB: loop body
LE: loop exit
PB: predicated region body
PF: predicated region fallthrough
CT: control target
= control target key end

     0   :  { %10 = vsyncpa [#allocation3], 0  ;;  %s1210_s0 = inlined_call_operand.vmem [shape: s32[2,8,1], index: 0, kind: input, shape index: {}]   ;;  %s1211_s1 = inlined_call_operand.hbm [shape: bf16[8,32], index: 1, kind: input, shape index: {}]   ;;  %s1212_s2 = inlined_call_operand.hbm [shape: f32[8,32], index: 2, kind: input, shape index: {}]   ;;  %s1213_s3 = inlined_call_operand.vmem [shape: bf16[32,96], index: 3, kind: input, shape index: {}]   ;;  %s1214_s4 = inlined_call_operand.vmem [shape: bf16[32,128], index: 4, kind: input, shape index: {}]   ;;  %s1215_s5 = inlined_call_operand.hbm [shape: f32[2,8,128], index: 5, kind: output, shape index: {}]  }
   0x1   :  { %11 = vsyncpa [#allocation6], 0 }
   0x2   :  { %12 = vsyncpa [#allocation4], 0 }
   0x3   :  { %14 = vsyncpa [#allocation4 + $0x1], 0  ;;  %s1000_s18 = smov 0   ;;  %s1002_s19 = smov 0  }
   0x4   :  { %s1004_s20 = smov 0   ;;  %s1006_s21 = smov 0  }
   0x5 LB: > { %s1021_s22 = sadd.s32 4294967295, %s960_s21   ;;  %s692_s23 = sadd.s32 4294967294, %s960_s21   ;;  %s960_s21 = sphi %s1006_s21, %s1233_s21   ;;  %s956_s20 = sphi %s1004_s20, %s1232_s20   ;;  %s952_s19 = sphi %s1002_s19, %s1231_s19   ;;  %s948_s18 = sphi %s1000_s18, %s1230_s18  }
   0x6   : > { %s1025_s24 = sadd.s32 1, %s960_s21   ;;  %s137_s25 = sadd.s32 1, %s956_s20 }
   0x7   : > { %s134_s26 = ssub.s32 %s960_s21, %s1025_s24  ;;  %p147_p0 = scmp.ne.s32.totalorder %s956_s20, %s952_s19 }
   0x8   : > { %p135_p1 = scmp.eq.s32.totalorder %s134_s26, 0  ;;  %p148_p2 = scmp.eq.s32.totalorder %s1021_s22, 1 }
   0x9   : > { %p153_p3 = scmp.ne.s32.totalorder %s952_s19, %s948_s18  ;;  %p154_p4 = scmp.eq.s32.totalorder %s692_s23, 1 }
   0xa   : > { %s1036_s27 = scalar_select %p135_p1, %s956_s20, %s137_s25  }
   0xb   : > { %p1038_p5 = por %p148_p2, %p147_p0  ;;  %p1042_p6 = por %p154_p4, %p153_p3 }
   0xc   : > { %p693_p7 = scmp.ge.s32.totalorder %s960_s21, 1  ;;  %p161_p8 = scmp.lt.s32.totalorder %s960_s21, 3 }
   0xd   : > { %s1219_s28 = scalar_select %p1038_p5, 1, 0 }
   0xe   : > { %s1220_s29 = scalar_select %p1042_p6, 1, 0 }
   0xf   : > { %p1216_p9 = scmp.eq.s32.totalorder %s1021_s22, 0  ;;  %p1049_p10 = pnand %p693_p7, %p161_p8 }
  0x10   : > { %s962_s6 = smov [#allocation2]   ;;  %s963_s8 = smov [#allocation5]  }
  0x11   : > { %s1221_s30 = scalar_select %p1049_p10, 1, 0 }
  0x12   : > { %s174_s7 = sshll.u32 %s962_s6, 4  ;;  %p770_p11 = pneg %p1049_p10  ;;  %s175_s7 = int_to_ptr.vmem [resolvable:$true] %s174_s7 }
  0x13   : > { %s185_s9 = sshll.u32 %s963_s8, 4  ;;  %s834_s13 = scalar_lea.hbm %s1211_s1, 64  ;;  %s1061_s9 = int_to_ptr.vmem [resolvable:$true] %s185_s9 }
  0x14   : > { %p1057_p12 = pnand %p1216_p9, %p770_p11  ;;  %p835_p13 = scmp.ne.s32.totalorder %s1211_s1, %s834_s13 }
  0x15   : > { %p841_p3 = scmp.lt.u32.totalorder %s834_s13, %s1211_s1 }
  0x16   : > { %p836_p0 = pneg %p1057_p12 }
  0x18   : > { %p837_p1 = pnand %p836_p0, %p835_p13 }
  0x1a   : > { %p838_p2 = pneg %p837_p1 }
  0x1c   : > { %p843_p4 = pnand %p841_p3, %p838_p2 }
  0x1e   : > { %846 = shalt.err (!%p843_p4)
}
  0x1f   : > { %s847_s23 = scalar_lea.vmem %s175_s7, 64  ;;  %p855_p9 = scmp.lt.s32.totalorder %s175_s7, %s175_s7 }
  0x20   : > { %p848_p7 = scmp.ne.s32.totalorder %s175_s7, %s847_s23  ;;  %p856_p6 = scmp.lt.s32.totalorder %s847_s23, %s847_s23 }
  0x22   : > { %p850_p8 = pnand %p848_p7, %p836_p0  ;;  %p857_p5 = por %p856_p6, %p855_p9 }
  0x24   : > { %p851_p11 = pneg %p850_p8 }
  0x26   : > { %p858_p10 = pnand %p857_p5, %p851_p11 }
  0x28   : > { %861 = shalt.err (!%p858_p10)
}
  0x29   : > { %773 = dma.hbm_to_vmem [thread:$0]  (!%p1057_p12), %s1211_s1, 64, %s175_s7, [#allocation3]  }
  0x2a   : > { %s862_s11 = scalar_lea.hbm %s1212_s2, 128 }
  0x2b   : > { %p863_p13 = scmp.ne.s32.totalorder %s1212_s2, %s862_s11  ;;  %p869_p9 = scmp.lt.u32.totalorder %s862_s11, %s1212_s2 }
  0x2d   : > { %p865_p6 = pnand %p863_p13, %p836_p0 }
  0x2f   : > { %p866_p5 = pneg %p865_p6 }
  0x31   : > { %p871_p10 = pnand %p869_p9, %p866_p5 }
  0x33   : > { %874 = shalt.err (!%p871_p10)
}
  0x34   : > { %s875_s7 = scalar_lea.vmem %s1061_s9, 128  ;;  %p883_p4 = scmp.lt.s32.totalorder %s1061_s9, %s1061_s9 }
  0x35   : > { %p876_p1 = scmp.ne.s32.totalorder %s1061_s9, %s875_s7  ;;  %p884_p7 = scmp.lt.s32.totalorder %s875_s7, %s875_s7 }
  0x37   : > { %p878_p2 = pnand %p876_p1, %p836_p0  ;;  %p885_p8 = por %p884_p7, %p883_p4 }
  0x39   : > { %p879_p3 = pneg %p878_p2 }
  0x3b   : > { %p886_p11 = pnand %p885_p8, %p879_p3 }
  0x3d   : > { %889 = shalt.err (!%p886_p11)
}
  0x3e   : > { %776 = dma.hbm_to_vmem [thread:$0]  (!%p1057_p12), %s1212_s2, 128, %s1061_s9, [#allocation6]  }
  0x3f   : > { %p1223_p13 = scmp.ne.s32.totalorder %s1221_s30, 0 }
  0x40   : > { %p1224_p6 = scmp.eq.s32.totalorder (!%p1223_p13), %s1021_s22, 0 }
  0x41   : > { %211 = sbr.rel (%p1223_p13) target bundleno = 1729 (0x6c1), region = 40 }
  0x48   : > { %935 = dma.done.wait (%p1224_p6), [#allocation3], 64   ;;  %p1225_p0 = pmov %p1224_p6 }
  0x4a   : > { %937 = vsyncadd (%p1225_p0), [#allocation3], 4294967232  ;;  %p1226_p5 = pmov %p1225_p0 }
  0x4b   : > { %p1227_p9 = pmov %p1225_p0 }
  0x4c   : > { %939 = dma.done.wait (%p1226_p5), [#allocation6], 128  }
  0x4d   : > { %941 = vsyncadd (%p1227_p9), [#allocation6], 4294967168  ;;  %p242_p10 = scmp.lt.s32.totalorder %s1021_s22, 1  ;;  %v964_v0 = vmov 0   ;;  %v965_v1 = vmov 0.0   ;;  %vm262_vm0 = vcmask 1043456   ;;  %v248_v6 = vlaneseq }
  0x4e   : > { %825 = vset.pattern.permute.xlu0 %v964_v0  ;;  %728 = vmatprep.subr.bf16.mxu0 %v965_v1  ;;  %v256_v3 = vld [vmem:[#allocation2] sm:$0xf]  ;;  %vm966_vm1 = vmmov 0   ;;  %vm258_vm3 = vcmask 64512   ;;  %v827_v11 = vld [vmem:[%s1213_s3 + $0x8] sm:$0xff]   ;;  %vm323_vm4 = vcmask 261120  }
  0x4f   : > { %s243_s30 = scalar_select %p242_p10, %s1021_s22, 1  ;;  %734 = vmatprep.subr.bf16.mxu1 %v965_v1  ;;  %v264_v4 = vsel %vm262_vm0, %v256_v3, 0  ;;  %730 = vmatprep.mubr.msk.bf16.mxu0 %vm966_vm1, %v965_v1  ;;  %v826_v5 = vld [vmem:[%s1213_s3] sm:$0xff]   ;;  %v249_v7 = vand.u32 127, %v248_v6  ;;  %v446_v25 = vshrl.u32 %v248_v6, 7  ;;  %v829_v37 = vld [vmem:[%s1214_s4 + $0x8] sm:$0xff]  }
  0x50   : > { %729 = vmatpush3.bf16.msra.mxu0 %v264_v4  ;;  %738 = vmatprep.mubr.msk.bf16.mxu1 %vm966_vm1, %v965_v1  ;;  %v257_v12 = vld [vmem:[#allocation5] sm:$0xff]  ;;  %s967_s12 = smov 96   ;;  %s968_s13 = smov 64  }
  0x51   : > { %s701_s9 = sshll.u32 %s243_s30, 3  ;;  %742 = vmatprep.subr.mxu0 %v965_v1  ;;  %735 = vmatpush3.bf16.msra.mxu1 %v826_v5  ;;  %vm447_vm5 = vcmp.le.s32.totalorder %v249_v7, %v446_v25  ;;  %v828_v36 = vld [vmem:[%s1214_s4] sm:$0xff]   ;;  %s239_s17 = sand.u32 1, %s952_s19  }
  0x52   : > { %s245_s25 = scalar_lea.vmem %s1210_s0, %s701_s9  ;;  %736 = vmatprep.subr.bf16.mxu1 %v965_v1  ;;  %s700_s30 = sshll.u32 %s239_s17, 3 }
  0x53   : > { %v247_v2 = vld [vmem:[%s245_s25] sm:$0xff]  ;;  %s241_s9 = scalar_lea.vmem [#allocation7], %s700_s30  ;;  %s713_s23 = sshll.u32 %s1021_s22, 7 }
  0x54   : > { %251 = vperm.xlu0 %825, %v247_v2   ;;  %s611_s10 = sshll.u32 %s241_s9, 4  ;;  %s1170_s6 = scalar_lea.hbm %s1215_s5, %s713_s23  ;;  %s1165_s10 = int_to_ptr.vmem [resolvable:$true] %s611_s10 }
  0x55   : > { %737 = vmatpush3.bf16.msra.mxu1 %v827_v11  ;;  %s598_s8 = scalar_lea.sflag [#allocation4], %s239_s17  ;;  %s890_s11 = scalar_lea.vmem %s1165_s10, 128 }
  0x56   : > { %752 = vmatprep.subr.bf16.mxu1 %v965_v1  ;;  %p891_p12 = scmp.ne.s32.totalorder %s1165_s10, %s890_s11  ;;  %p1228_p1 = scmp.ne.s32.totalorder %s1219_s28, 0 }
  0x57   : > { %s969_s22 = smov [#allocation7]  }
  0x58   : > { %p892_p2 = pnand %p891_p12, %p1228_p1 }
  0x5a   : > { %p893_p3 = pneg %p892_p2 }
  0xd3   : > { %v252_v8 = vpop.permute.xlu0 %251 }
  0xd4   : > { %vm253_vm2 = vcmp.eq.s32.totalorder %v252_v8, %v249_v7 }
  0xd5   : > { %v254_v9 = vsel %vm253_vm2, 1.0, %v965_v1 }
  0xd6   : > { %v255_v10 = vpack.c.bf16 %v254_v9, %v254_v9 }
  0xd8   : > { %731 = vmatmul.mubr.msk.bf16.vlgmr.msra.gmra.mrb[0].mxu0 %vm258_vm3, %v255_v10 }
  0xd9   : > { %744 = vmatprep.mubr.msk.f32.mxu0 %vm966_vm1, %v965_v1 }
 0x1ab   : > { %v300_v13 = vpop.f32.mrb[0].mxu0 }
 0x1ac   : > { %v301_v14 = vadd.f32 %v300_v13, %v257_v12  ;;  %v732_v15 = vpop.f32.mrb[1].mxu0 }
 0x1ad   : > { %v303_v16 = vpop.f32.mrb[2].mxu0 }
 0x1ae   : > { %v306_v17 = vpack.c.bf16 %v301_v14, %v301_v14  ;;  %v733_v18 = vpop.f32.mrb[3].mxu0 }
 0x1b0   : > { %739 = vmatmul.mubr.msk.bf16.vlgmr.msra.gmra.mrb[0].mxu1 %vm323_vm4, %v306_v17 }
 0x1b1   : > { %756 = vmatprep.mubr.msk.bf16.mxu1 %vm966_vm1, %v965_v1  ;;  %753 = vmatpush3.bf16.msra.mxu1 %v828_v36 }
 0x1b2   : > { %754 = vmatprep.subr.bf16.mxu1 %v965_v1 }
 0x1b5   : > { %755 = vmatpush3.bf16.msra.mxu1 %v829_v37 }
 0x283   : > { %v361_v19 = vpop.f32.mrb[0].mxu1 }
 0x284   : > { %368 = vrot.lane.b32.xlu0 %v361_v19, %s967_s12  ;;  %v740_v20 = vpop.f32.mrb[1].mxu1  ;;  %743 = vmatpush3.xpose.msk.msra.mxu0 %vm323_vm4, %v361_v19  ;;  %s894_s12 = sshll.u32 %s969_s22, 4  ;;  %s895_s12 = int_to_ptr.vmem [resolvable:$false] %s894_s12 }
 0x285   : > { %v364_v21 = vpop.f32.mrb[2].mxu1  ;;  %747 = vmatprep.subr.mxu0 %v965_v1  ;;  %p897_p4 = scmp.lt.s32.totalorder %s1165_s10, %s895_s12 }
 0x286   : > { %v741_v22 = vpop.f32.mrb[3].mxu1 }
 0x288   : > { %460 = vrot.lane.b32.xlu0 %v361_v19, %s968_s13  ;;  %s896_s13 = scalar_lea.vmem %s895_s12, 256 }
 0x289   : > { %p898_p7 = scmp.lt.s32.totalorder %s896_s13, %s890_s11 }
 0x28b   : > { %p899_p8 = por %p898_p7, %p897_p4 }
 0x28d   : > { %p900_p11 = pnand %p899_p8, %p893_p3 }
 0x2f6   : > { %v369_v23 = vpop.permute.xlu0 %368 }
 0x2f7   : > { %745 = vmatmul.mubr.msk.f32.vlgmr.msra.gmra.mrb[4].mxu0 %vm323_vm4, %v369_v23 }
 0x2f8   : > { %749 = vmatprep.mubr.msk.f32.mxu0 %vm966_vm1, %v965_v1 }
 0x2fa   : > { %v461_v24 = vpop.permute.xlu0 %460 }
 0x2fb   : > { %748 = vmatpush3.msra.mxu0 %v461_v24 }
 0x3ca   : > { %v440_v26 = vpop.f32.mrb[4].mxu0 }
 0x3cb   : > { %v444_v27 = vmul.f32 0.17677669, %v440_v26  ;;  %v746_v28 = vpop.f32.mrb[5].mxu0 }
 0x3cd   : > { %v448_v29 = vsel %vm447_vm5, %v444_v27, -1e+30 }
 0x3ce   : > { %v449_v30 = vsel %vm258_vm3, %v448_v29, -inf }
 0x3cf   : > { %450 = vmax.xlane.f32.xlu1 %v449_v30 }
 0x45c   : > { %v451_v31 = vpop.xlane.xlu1 %450 }
 0x45d   : > { %v452_v32 = vsub.f32 %v448_v29, %v451_v31 }
 0x45f   : > { %v453_v33 = vmul.f32 1.442695, %v452_v32 }
 0x461   : > { %830 = vpow2.f32 %v453_v33 }
 0x46b   : > { %v831_v34 = vpop.eup %830 }
 0x46c   : > { %v455_v35 = vsel %vm258_vm3, %v831_v34, 0.0 }
 0x46d   : > { %456 = vadd.xlane.f32.xlu1 %v455_v35 }
 0x4fa   : > { %v457_v38 = vpop.xlane.xlu1 %456 }
 0x4fb   : > { %832 = vrcp.f32 %v457_v38 }
 0x505   : > { %v833_v39 = vpop.eup %832 }
 0x506   : > { %v459_v40 = vmul.f32 %v833_v39, %v831_v34 }
 0x508   : > { %750 = vmatmul.mubr.msk.f32.vlgmr.msra.gmra.mrb[6].mxu0 %vm258_vm3, %v459_v40 }
 0x5db   : > { %v532_v41 = vpop.f32.mrb[6].mxu0 }
 0x5dc   : > { %v536_v42 = vpack.c.bf16 %v532_v41, %v532_v41  ;;  %v751_v43 = vpop.f32.mrb[7].mxu0 }
 0x5de   : > { %757 = vmatmul.mubr.msk.bf16.vlgmr.msra.gmra.mrb[4].mxu1 %vm323_vm4, %v536_v42 }
 0x6b1   : > { %v590_v44 = vpop.f32.mrb[4].mxu1 }
 0x6b2   : > { %596 = vst [vmem:[%s241_s9] sm:$0xff] %v590_v44  ;;  %v758_v45 = vpop.f32.mrb[5].mxu1 }
 0x6b3   : > { %v593_v46 = vpop.f32.mrb[6].mxu1 }
 0x6b4   : > { %903 = shalt.err (!%p900_p11)
}
 0x6b5   : > { %s904_s14 = scalar_lea.hbm %s1170_s6, 128  ;;  %s908_s16 = scalar_lea.hbm %s1215_s5, 256 }
 0x6b6   : > { %p905_p13 = scmp.ne.s32.totalorder %s1170_s6, %s904_s14  ;;  %p909_p5 = scmp.lt.u32.totalorder %s1170_s6, %s1215_s5 }
 0x6b7   : > { %p910_p9 = scmp.lt.u32.totalorder %s908_s16, %s904_s14  ;;  %p912_p12 = scmp.lt.u32.totalorder %s904_s14, %s1170_s6 }
 0x6b8   : > { %p906_p6 = pnand %p905_p13, %p1228_p1 }
 0x6b9   : > { %p911_p10 = por %p910_p9, %p909_p5 }
 0x6ba   : > { %p907_p0 = pneg %p906_p6 }
 0x6bb   : > { %p913_p2 = por %p912_p12, %p911_p10 }
 0x6bd   : > { %p914_p3 = pnand %p913_p2, %p907_p0 }
 0x6bf   : > { %917 = shalt.err (!%p914_p3)
}
 0x6c0   : > { %768 = dma.vmem_to_hbm [thread:$0]  (%p1228_p1), %s1165_s10, 128, %s1170_s6, %s598_s8   ;;  %v759_v47 = vpop.f32.mrb[7].mxu1 }
 0x6c1 PF: > { %p785_p4 = scmp.ge.s32.totalorder %s960_s21, 2  ;;  %s623_s9 = sand.u32 1, %s948_s18  }
 0x6c2   : > { %p1229_p7 = scmp.ne.s32.totalorder %s1220_s29, 0  ;;  %s624_s23 = scalar_lea.sflag [#allocation4], %s623_s9 }
 0x6c4   : > { %p778_p8 = pnand %p785_p4, %p1229_p7 }
 0x6c6   : > { %943 = dma.done.wait (!%p778_p8), %s624_s23, 128  }
 0x6c7   : > { %945 = vsyncadd (!%p778_p8), %s624_s23, 4294967168  ;;  %p17_p11 = scmp.ge.s32.totalorder %s1025_s24, 4   ;;  %s1230_s18 = smov %s952_s19 }
 0x6c8   : > { %s1231_s19 = smov %s956_s20  ;;  %s1232_s20 = smov %s1036_s27 }
 0x6c9   : > { %s1233_s21 = smov %s1025_s24  ;;  %19 = sbr.rel (!%p17_p11) target bundleno = 5 (0x5), region = 84 }
 0x6d0   :  { %629 = vsyncpa [#allocation3], 1 }
 0x6d1   :  { %631 = vsyncpa [#allocation3 + $0x1], 1 }
 0x6d2   :  { %632 = vsyncpa [#allocation6], 1 }
 0x6d3   :  { %633 = vsyncpa [#allocation4], 1 }
 0x6d4   :  { %635 = vsyncpa [#allocation4 + $0x1], 1 }

</bundles_post_ra>
